<compile_context>
chip_gen: v6e
topology: v6e:2x2x1
jax: 0.10.0
libtpu: 0.0.40
codegen_flags: <defaults>
</compile_context>

<pallas_src>
import functools
import math

import jax
import jax.numpy as jnp
import numpy as np
from jax import lax
from jax.experimental import pallas as pl
from jax.experimental.pallas import tpu as pltpu


def _round_up(v, m):
    return ((v + m - 1) // m) * m


def _vmem_capacity_bytes():
    try:
        return int(pltpu.get_tpu_info().vmem_capacity_bytes)
    except Exception:
        return 64 * 1024 * 1024          # conservative fallback (v7x physical VMEM)


def _pick_tb(T, Nb, X, Yp, vmem_budget, m_align=256, m_target=1024):
    """Time-batch size: rows of 'actual'/Vs handled per grid step."""
    bytes_per_row = Nb * (2 * Yp * 4     # double-buffered Vs output row (f32)
                          + X * 2        # bf16 'actual' row
                          + X * 4        # iota / compare temporaries
                          + Yp * 8)      # matmul result + select temporaries
    cap = max(1, min(vmem_budget // max(bytes_per_row, 1),
                     pl.cdiv(m_target, Nb),   # target MXU M rows per matmul
                     T + 1))                  # never more rows than exist (incl. sentinel)
    # Balance time blocks, then round M = Tb*Nb up to the MXU M tile (256 on
    # v6e/v7x; a multiple of 128 so it is also fine on v5e) when that still fits.
    n_blocks = pl.cdiv(T + 1, cap)
    tb = pl.cdiv(T + 1, n_blocks)
    step = m_align // math.gcd(Nb, m_align)
    if step > 1 and cap >= step:
        tb = min(_round_up(tb, step), cap)
    return max(1, tb)


def _dense_v_kernel(x_ref, w_hi_ref, w_lo_ref, vs_ref, spike_ref, *,
                    T, Tb, theta, t_in_last_block, two_pass):
    Nb, X = x_ref.shape
    Yp = vs_ref.shape[-1]
    ti = pl.program_id(1)
    t_base = (ti * Tb).astype(jnp.float32)

    # The spike-time output block is resident across the inner ("arbitrary")
    # time axis -> use it directly as the first-crossing accumulator.
    @pl.when(ti == 0)
    def _():
        spike_ref[...] = jnp.full_like(spike_ref, jnp.float32(T + 1))

    # Rows with t_global >= T are sentinel/padding, handled below; a block that
    # starts at/after T (only possible for the last block when Tb | T) skips the
    # matmul entirely.
    @pl.when(t_base < jnp.float32(T))
    def _():
        # Hoist the time offset into x once per grid step (Nb*X subtracts)
        # instead of adding it to a (Tb,Nb,X) iota; build 'actual' directly in
        # bf16 (values are exactly 0/1, so the cast is lossless).
        x_shift = x_ref[...] - t_base                                   # (Nb, X)
        step = lax.broadcasted_iota(jnp.int32, (Tb, Nb, X), 0).astype(jnp.float32)
        actual = (step >= x_shift[None, :, :]).astype(jnp.bfloat16)     # (Tb, Nb, X)
        a2d = actual.reshape(Tb * Nb, X)

        # One bf16 MXU pass over all Tb steps; the optional second pass with the
        # low-order bf16 weight part recovers ~f32 accuracy while staying far
        # below the emulated-f32 matmul cost.
        v2d = jnp.dot(a2d, w_hi_ref[...], preferred_element_type=jnp.float32)
        if two_pass:
            v2d = v2d + jnp.dot(a2d, w_lo_ref[...],
                                preferred_element_type=jnp.float32)
        v = v2d.reshape(Tb, Nb, Yp)
        vs_ref[...] = v                                                 # block store

        # First crossing: unrolled over the Tb axis with scalar step times --
        # no (Tb,Nb,Yp) iota/cand temporaries.  Rows past T produce candidates
        # >= T+1 and can never win against the T+1-initialized accumulator.
        acc = spike_ref[...]
        for t in range(Tb):
            cand = jnp.where(v[t] > theta, t_base + jnp.float32(t + 1),
                             jnp.float32(T + 1))
            acc = jnp.minimum(acc, cand)
        spike_ref[...] = acc

    # Last time block: write the theta+1 sentinel row (plus any padding rows
    # behind it) directly into V -- no wrapper-side concatenate -- and apply the
    # final clamp to T before the single spike writeback.
    @pl.when(ti == pl.num_programs(1) - 1)
    def _():
        vs_ref[t_in_last_block:, :, :] = jnp.full(
            (Tb - t_in_last_block, Nb, Yp), theta + 1.0, dtype=vs_ref.dtype)
        spike_ref[...] = jnp.minimum(spike_ref[...], jnp.float32(T))


def dense_voltage_forward(x, weight, t_series, T, theta=1.0, *, mxu_mode="bf16x2"):
    """Pallas forward of Dense_Voltage.

    x: (N, X) f32, weight: (X, Y) f32, t_series: (T,) f32 (must equal 0..T-1).
    Returns (output (N, Y) f32, V (T+1, N, Y) f32).
    mxu_mode: "bf16x2" (default, ~f32-accurate two-pass bf16) or "bf16" (single pass).
    """
    N, X = x.shape
    Xw, Y = weight.shape
    assert Xw == X and T >= 1

    # The kernel derives the step values (exactly 0..T-1) from the grid index;
    # fail loudly if a caller ever passes a different t_series.
    if t_series is not None:
        try:
            ts = np.asarray(t_series, dtype=np.float32)
        except Exception:
            ts = None            # traced under jit: trust the caller
        if ts is not None and (ts.shape != (T,) or
                               not np.allclose(ts, np.arange(T, dtype=np.float32))):
            raise ValueError("dense_voltage_forward assumes t_series == linspace(0, T-1, T)")

    # ---- padding / tiling ---------------------------------------------------
    N_pad = _round_up(max(N, 8), 8)
    # Lane dim: keep the true Y extent when it is small (<=128) -- padding tiny Y
    # to 128 would make >80% of the dominant Vs writeback stream padding bytes.
    Y_pad = Y if (Y <= 128 or Y % 128 == 0) else _round_up(Y, 128)

    x_p = x.astype(jnp.float32)
    if N_pad != N:
        x_p = jnp.pad(x_p, ((0, N_pad - N), (0, 0)),
                      constant_values=jnp.float32(T))     # padded rows never spike
    w_f32 = weight.astype(jnp.float32)
    if Y_pad != Y:
        w_f32 = jnp.pad(w_f32, ((0, 0), (0, Y_pad - Y)))  # zero cols never cross theta
    # hi/lo bf16 split of the f32 weight: 'actual' is exactly 0/1 in bf16, so two
    # bf16 MXU passes accumulated in f32 reproduce the f32 matmul to ~2^-18 rel.
    w_hi = w_f32.astype(jnp.bfloat16)
    w_lo = (w_f32 - w_hi.astype(jnp.float32)).astype(jnp.bfloat16)

    # N tile (parallel axis): <=256 rows; on multi-TensorCore parts make sure the
    # parallel axis has at least two tiles when N allows.
    Nb = min(N_pad, 256)
    if N_pad // Nb < 2 and N_pad >= 16:
        Nb = _round_up(N_pad // 2, 8)
    while N_pad % Nb:
        Nb -= 8

    capacity = _vmem_capacity_bytes()
    # Generation-aware time-batch budget: ~24 MiB on 128 MiB parts (v5e/v6e),
    # ~12 MiB on 64 MiB parts (v7x).
    tb_budget = min(capacity // 5, 24 * 1024 * 1024)
    Tb = _pick_tb(T, Nb, X, Y_pad, tb_budget)
    n_tblocks = pl.cdiv(T + 1, Tb)            # +1: sentinel row lives in the tail
    T_out = n_tblocks * Tb                    # >= T + 1 by construction
    t_in_last_block = T - (n_tblocks - 1) * Tb  # first sentinel/pad row of last block

    # VMEM accounting (double-buffered pipeline blocks + in-kernel temporaries).
    est = (2 * Nb * X * 4                 # x tile (f32), double buffered
           + 2 * 2 * X * Y_pad * 2        # w_hi + w_lo (bf16), double buffered
           + 2 * Tb * Nb * Y_pad * 4      # Vs output block, double buffered
           + 2 * Nb * Y_pad * 4           # spike output block
           + Tb * Nb * X * 4              # iota + compare temporaries
           + Tb * Nb * X * 2              # bf16 'actual'
           + 2 * Tb * Nb * Y_pad * 4)     # matmul result + select temporaries
    vmem_limit = int(min(max(2 * est, 32 * 1024 * 1024), int(0.8 * capacity)))

    kernel = functools.partial(_dense_v_kernel, T=T, Tb=Tb, theta=float(theta),
                               t_in_last_block=t_in_last_block,
                               two_pass=(mxu_mode == "bf16x2"))

    vs_p, spike_p = pl.pallas_call(
        kernel,
        out_shape=(jax.ShapeDtypeStruct((T_out, N_pad, Y_pad), jnp.float32),
                   jax.ShapeDtypeStruct((N_pad, Y_pad), jnp.float32)),
        grid_spec=pltpu.PrefetchScalarGridSpec(
            num_scalar_prefetch=0,
            grid=(N_pad // Nb, n_tblocks),
            in_specs=[
                pl.BlockSpec((Nb, X), lambda ni, ti: (ni, 0)),       # x tile
                pl.BlockSpec((X, Y_pad), lambda ni, ti: (0, 0)),     # w_hi, resident
                pl.BlockSpec((X, Y_pad), lambda ni, ti: (0, 0)),     # w_lo, resident
            ],
            out_specs=(
                pl.BlockSpec((Tb, Nb, Y_pad), lambda ni, ti: (ti, ni, 0)),  # V block
                pl.BlockSpec((Nb, Y_pad), lambda ni, ti: (ni, 0)),          # spike times
            ),
        ),
        compiler_params=pltpu.CompilerParams(
            dimension_semantics=("parallel", "arbitrary"),
            vmem_limit_bytes=vmem_limit),
    )(x_p, w_hi, w_lo)

    # V already contains the theta+1 sentinel row (written in-kernel); only slice
    # when padding was actually introduced.
    V = vs_p if (T_out, N_pad, Y_pad) == (T + 1, N, Y) else vs_p[:T + 1, :N, :Y]
    spike = spike_p if (N_pad, Y_pad) == (N, Y) else spike_p[:N, :Y]
    return spike, V


def reference_forward(x, weight, t_series, T, theta=1.0):
    """Pure-JAX mirror of the PyTorch _dense_v.forward for verification."""
    actual = (t_series[:, None, None] >= x[None, :, :]).astype(jnp.float32)  # (T, N, X)
    Vs = jnp.einsum('tnx,xy->tny', actual, weight,
                    preferred_element_type=jnp.float32,
                    precision=lax.Precision.HIGHEST)                          # (T, N, Y)
    V = jnp.concatenate([Vs, jnp.full_like(Vs[0:1], theta + 1.0)], axis=0)    # (T+1, N, Y)
    out = jnp.argmax((V > theta).astype(jnp.float32), axis=0) + 1
    out = jnp.minimum(out, T).astype(jnp.float32)
    return out, V


if __name__ == "__main__":
    # Small shapes consistent with the module's forward; N and Y deliberately
    # non-tile-aligned to exercise the padding / true-lane-extent paths.
    N, X, Y, T = 6, 32, 20, 16
    theta = 1.0

    key = jax.random.PRNGKey(0)
    kx, kw = jax.random.split(key)
    x = jax.random.uniform(kx, (N, X), jnp.float32, 0.0, float(T))
    weight = jax.random.normal(kw, (X, Y), jnp.float32) * 0.1
    t_series = jnp.linspace(0.0, T - 1, T, dtype=jnp.float32)

    out, V = dense_voltage_forward(x, weight, t_series, T, theta)
    jax.block_until_ready((out, V))

    out_ref, V_ref = reference_forward(x, weight, t_series, T, theta)
    assert out.shape == (N, Y) and out.dtype == jnp.float32
    assert V.shape == (T + 1, N, Y) and V.dtype == jnp.float32
    # Two-pass bf16 split vs HIGHEST-precision f32 reference: agreement to ~1e-5.
    assert jnp.allclose(V, V_ref, rtol=1e-5, atol=1e-4), \
        float(jnp.max(jnp.abs(V - V_ref)))
    # Spike times depend on a strict v > theta comparison; tolerate float ties.
    match_frac = float(jnp.mean((out == out_ref).astype(jnp.float32)))
    assert match_frac >= 0.99, match_frac

    print("KERNEL_OK")
</pallas_src>

<mosaic_0001>
module attributes {stable_mosaic.version = 11 : i64} {
  func.func @_dense_v_kernel(%arg0: i32, %arg1: i32, %arg2: memref<8x32xf32, #tpu.memory_space<vmem>>, %arg3: memref<32x20xbf16, #tpu.memory_space<vmem>>, %arg4: memref<32x20xbf16, #tpu.memory_space<vmem>>, %arg5: memref<17x8x20xf32, #tpu.memory_space<vmem>>, %arg6: memref<8x20xf32, #tpu.memory_space<vmem>>) attributes {dimension_semantics = [#tpu.dimension_semantics<parallel>, #tpu.dimension_semantics<arbitrary>], iteration_bounds = array<i64: 1, 1>, scalar_prefetch = 0 : i64, scratch_operands = 0 : i64, tpu.core_type = #tpu.core_type<tc>, window_params = [{transform_indices = @transform_0, window_bounds = array<i64: 8, 32>}, {pipeline_mode = #tpu.pipeline_mode<synchronous>, transform_indices = @transform_1, window_bounds = array<i64: 32, 20>}, {pipeline_mode = #tpu.pipeline_mode<synchronous>, transform_indices = @transform_2, window_bounds = array<i64: 32, 20>}, {transform_indices = @transform_3, window_bounds = array<i64: 17, 8, 20>}, {transform_indices = @transform_4, window_bounds = array<i64: 8, 20>}]} {
    %c17_i32 = arith.constant 17 : i32
    %0 = arith.muli %arg1, %c17_i32 : i32
    %1 = arith.sitofp %0 : i32 to f32
    %c0_i32 = arith.constant 0 : i32
    %2 = arith.cmpi eq, %arg1, %c0_i32 : i32
    %3 = arith.extui %2 : i1 to i32
    %c0_i32_0 = arith.constant 0 : i32
    %4 = arith.cmpi ne, %3, %c0_i32_0 : i32
    scf.if %4 {
      %cst_4 = arith.constant 1.700000e+01 : f32
      %11 = vector.broadcast %cst_4 : f32 to vector<8x20xf32>
      %c0 = arith.constant 0 : index
      %c0_5 = arith.constant 0 : index
      %12 = vector.load %arg6[%c0, %c0_5] : memref<8x20xf32, #tpu.memory_space<vmem>>, vector<8x20xf32>
      tpu.vector_store %arg6[%c0, %c0_5], %11 {strides = array<i32>} : memref<8x20xf32, #tpu.memory_space<vmem>>, vector<8x20xf32>,
    } else {
    }
    %cst = arith.constant 1.600000e+01 : f32
    %5 = arith.cmpf olt, %1, %cst : f32
    %6 = arith.extui %5 : i1 to i32
    %c0_i32_1 = arith.constant 0 : i32
    %7 = arith.cmpi ne, %6, %c0_i32_1 : i32
    scf.if %7 {
      %c0 = arith.constant 0 : index
      %c0_4 = arith.constant 0 : index
      %11 = vector.load %arg2[%c0, %c0_4] : memref<8x32xf32, #tpu.memory_space<vmem>>, vector<8x32xf32>
      %12 = vector.broadcast %1 : f32 to vector<8x32xf32>
      %13 = arith.subf %11, %12 : vector<8x32xf32>
      %14 = tpu.iota {dimensions = array<i32: 0>} : vector<17x8x32xi32>
      %15 = arith.sitofp %14 : vector<17x8x32xi32> to vector<17x8x32xf32>
      %16 = vector.shape_cast %13 : vector<8x32xf32> to vector<1x8x32xf32>
      %17 = vector.broadcast %16 : vector<1x8x32xf32> to vector<17x8x32xf32>
      %18 = arith.cmpf oge, %15, %17 : vector<17x8x32xf32>
      %19 = arith.extui %18 : vector<17x8x32xi1> to vector<17x8x32xi32>
      %20 = arith.sitofp %19 : vector<17x8x32xi32> to vector<17x8x32xf32>
      %21 = arith.truncf %20 : vector<17x8x32xf32> to vector<17x8x32xbf16>
      %22 = vector.shape_cast %21 : vector<17x8x32xbf16> to vector<136x32xbf16>
      %c0_5 = arith.constant 0 : index
      %c0_6 = arith.constant 0 : index
      %23 = vector.load %arg3[%c0_5, %c0_6] : memref<32x20xbf16, #tpu.memory_space<vmem>>, vector<32x20xbf16>
      %cst_7 = arith.constant dense<0.000000e+00> : vector<136x20xf32>
      %24 = tpu.matmul %22, %23, %cst_7 {dimension_numbers = #tpu.dot_dimension_numbers<[1], [0], [0], [1], [0, 0, 1, 1], [], []>} : vector<136x32xbf16>, vector<32x20xbf16>, vector<136x20xf32> -> vector<136x20xf32>
      %c0_8 = arith.constant 0 : index
      %c0_9 = arith.constant 0 : index
      %25 = vector.load %arg4[%c0_8, %c0_9] : memref<32x20xbf16, #tpu.memory_space<vmem>>, vector<32x20xbf16>
      %cst_10 = arith.constant dense<0.000000e+00> : vector<136x20xf32>
      %26 = tpu.matmul %22, %25, %cst_10 {dimension_numbers = #tpu.dot_dimension_numbers<[1], [0], [0], [1], [0, 0, 1, 1], [], []>} : vector<136x32xbf16>, vector<32x20xbf16>, vector<136x20xf32> -> vector<136x20xf32>
      %27 = arith.addf %24, %26 : vector<136x20xf32>
      %28 = vector.shape_cast %27 : vector<136x20xf32> to vector<17x8x20xf32>
      %c0_11 = arith.constant 0 : index
      %c0_12 = arith.constant 0 : index
      %c0_13 = arith.constant 0 : index
      %29 = vector.load %arg5[%c0_11, %c0_12, %c0_13] : memref<17x8x20xf32, #tpu.memory_space<vmem>>, vector<17x8x20xf32>
      tpu.vector_store %arg5[%c0_11, %c0_12, %c0_13], %28 {strides = array<i32>} : memref<17x8x20xf32, #tpu.memory_space<vmem>>, vector<17x8x20xf32>,
      %c0_14 = arith.constant 0 : index
      %c0_15 = arith.constant 0 : index
      %30 = vector.load %arg6[%c0_14, %c0_15] : memref<8x20xf32, #tpu.memory_space<vmem>>, vector<8x20xf32>
      %31 = vector.extract_strided_slice %28 {offsets = [0, 0, 0], sizes = [1, 8, 20], strides = [1, 1, 1]} : vector<17x8x20xf32> to vector<1x8x20xf32>
      %32 = vector.shape_cast %31 : vector<1x8x20xf32> to vector<8x20xf32>
      %cst_16 = arith.constant 1.000000e+00 : f32
      %33 = vector.broadcast %cst_16 : f32 to vector<8x20xf32>
      %34 = arith.cmpf ogt, %32, %33 : vector<8x20xf32>
      %cst_17 = arith.constant 1.000000e+00 : f32
      %35 = arith.addf %1, %cst_17 : f32
      %cst_18 = arith.constant 1.700000e+01 : f32
      %36 = vector.broadcast %35 : f32 to vector<8x20xf32>
      %37 = vector.broadcast %cst_18 : f32 to vector<8x20xf32>
      %38 = arith.select %34, %36, %37 : vector<8x20xi1>, vector<8x20xf32>
      %39 = arith.minimumf %30, %38 : vector<8x20xf32>
      %40 = vector.extract_strided_slice %28 {offsets = [1, 0, 0], sizes = [1, 8, 20], strides = [1, 1, 1]} : vector<17x8x20xf32> to vector<1x8x20xf32>
      %41 = vector.shape_cast %40 : vector<1x8x20xf32> to vector<8x20xf32>
      %cst_19 = arith.constant 1.000000e+00 : f32
      %42 = vector.broadcast %cst_19 : f32 to vector<8x20xf32>
      %43 = arith.cmpf ogt, %41, %42 : vector<8x20xf32>
      %cst_20 = arith.constant 2.000000e+00 : f32
      %44 = arith.addf %1, %cst_20 : f32
      %cst_21 = arith.constant 1.700000e+01 : f32
      %45 = vector.broadcast %44 : f32 to vector<8x20xf32>
      %46 = vector.broadcast %cst_21 : f32 to vector<8x20xf32>
      %47 = arith.select %43, %45, %46 : vector<8x20xi1>, vector<8x20xf32>
      %48 = arith.minimumf %39, %47 : vector<8x20xf32>
      %49 = vector.extract_strided_slice %28 {offsets = [2, 0, 0], sizes = [1, 8, 20], strides = [1, 1, 1]} : vector<17x8x20xf32> to vector<1x8x20xf32>
      %50 = vector.shape_cast %49 : vector<1x8x20xf32> to vector<8x20xf32>
      %cst_22 = arith.constant 1.000000e+00 : f32
      %51 = vector.broadcast %cst_22 : f32 to vector<8x20xf32>
      %52 = arith.cmpf ogt, %50, %51 : vector<8x20xf32>
      %cst_23 = arith.constant 3.000000e+00 : f32
      %53 = arith.addf %1, %cst_23 : f32
      %cst_24 = arith.constant 1.700000e+01 : f32
      %54 = vector.broadcast %53 : f32 to vector<8x20xf32>
      %55 = vector.broadcast %cst_24 : f32 to vector<8x20xf32>
      %56 = arith.select %52, %54, %55 : vector<8x20xi1>, vector<8x20xf32>
      %57 = arith.minimumf %48, %56 : vector<8x20xf32>
      %58 = vector.extract_strided_slice %28 {offsets = [3, 0, 0], sizes = [1, 8, 20], strides = [1, 1, 1]} : vector<17x8x20xf32> to vector<1x8x20xf32>
      %59 = vector.shape_cast %58 : vector<1x8x20xf32> to vector<8x20xf32>
      %cst_25 = arith.constant 1.000000e+00 : f32
      %60 = vector.broadcast %cst_25 : f32 to vector<8x20xf32>
      %61 = arith.cmpf ogt, %59, %60 : vector<8x20xf32>
      %cst_26 = arith.constant 4.000000e+00 : f32
      %62 = arith.addf %1, %cst_26 : f32
      %cst_27 = arith.constant 1.700000e+01 : f32
      %63 = vector.broadcast %62 : f32 to vector<8x20xf32>
      %64 = vector.broadcast %cst_27 : f32 to vector<8x20xf32>
      %65 = arith.select %61, %63, %64 : vector<8x20xi1>, vector<8x20xf32>
      %66 = arith.minimumf %57, %65 : vector<8x20xf32>
      %67 = vector.extract_strided_slice %28 {offsets = [4, 0, 0], sizes = [1, 8, 20], strides = [1, 1, 1]} : vector<17x8x20xf32> to vector<1x8x20xf32>
      %68 = vector.shape_cast %67 : vector<1x8x20xf32> to vector<8x20xf32>
      %cst_28 = arith.constant 1.000000e+00 : f32
      %69 = vector.broadcast %cst_28 : f32 to vector<8x20xf32>
      %70 = arith.cmpf ogt, %68, %69 : vector<8x20xf32>
      %cst_29 = arith.constant 5.000000e+00 : f32
      %71 = arith.addf %1, %cst_29 : f32
      %cst_30 = arith.constant 1.700000e+01 : f32
      %72 = vector.broadcast %71 : f32 to vector<8x20xf32>
      %73 = vector.broadcast %cst_30 : f32 to vector<8x20xf32>
      %74 = arith.select %70, %72, %73 : vector<8x20xi1>, vector<8x20xf32>
      %75 = arith.minimumf %66, %74 : vector<8x20xf32>
      %76 = vector.extract_strided_slice %28 {offsets = [5, 0, 0], sizes = [1, 8, 20], strides = [1, 1, 1]} : vector<17x8x20xf32> to vector<1x8x20xf32>
      %77 = vector.shape_cast %76 : vector<1x8x20xf32> to vector<8x20xf32>
      %cst_31 = arith.constant 1.000000e+00 : f32
      %78 = vector.broadcast %cst_31 : f32 to vector<8x20xf32>
      %79 = arith.cmpf ogt, %77, %78 : vector<8x20xf32>
      %cst_32 = arith.constant 6.000000e+00 : f32
      %80 = arith.addf %1, %cst_32 : f32
      %cst_33 = arith.constant 1.700000e+01 : f32
      %81 = vector.broadcast %80 : f32 to vector<8x20xf32>
      %82 = vector.broadcast %cst_33 : f32 to vector<8x20xf32>
      %83 = arith.select %79, %81, %82 : vector<8x20xi1>, vector<8x20xf32>
      %84 = arith.minimumf %75, %83 : vector<8x20xf32>
      %85 = vector.extract_strided_slice %28 {offsets = [6, 0, 0], sizes = [1, 8, 20], strides = [1, 1, 1]} : vector<17x8x20xf32> to vector<1x8x20xf32>
      %86 = vector.shape_cast %85 : vector<1x8x20xf32> to vector<8x20xf32>
      %cst_34 = arith.constant 1.000000e+00 : f32
      %87 = vector.broadcast %cst_34 : f32 to vector<8x20xf32>
      %88 = arith.cmpf ogt, %86, %87 : vector<8x20xf32>
      %cst_35 = arith.constant 7.000000e+00 : f32
      %89 = arith.addf %1, %cst_35 : f32
      %cst_36 = arith.constant 1.700000e+01 : f32
      %90 = vector.broadcast %89 : f32 to vector<8x20xf32>
      %91 = vector.broadcast %cst_36 : f32 to vector<8x20xf32>
      %92 = arith.select %88, %90, %91 : vector<8x20xi1>, vector<8x20xf32>
      %93 = arith.minimumf %84, %92 : vector<8x20xf32>
      %94 = vector.extract_strided_slice %28 {offsets = [7, 0, 0], sizes = [1, 8, 20], strides = [1, 1, 1]} : vector<17x8x20xf32> to vector<1x8x20xf32>
      %95 = vector.shape_cast %94 : vector<1x8x20xf32> to vector<8x20xf32>
      %cst_37 = arith.constant 1.000000e+00 : f32
      %96 = vector.broadcast %cst_37 : f32 to vector<8x20xf32>
      %97 = arith.cmpf ogt, %95, %96 : vector<8x20xf32>
      %cst_38 = arith.constant 8.000000e+00 : f32
      %98 = arith.addf %1, %cst_38 : f32
      %cst_39 = arith.constant 1.700000e+01 : f32
      %99 = vector.broadcast %98 : f32 to vector<8x20xf32>
      %100 = vector.broadcast %cst_39 : f32 to vector<8x20xf32>
      %101 = arith.select %97, %99, %100 : vector<8x20xi1>, vector<8x20xf32>
      %102 = arith.minimumf %93, %101 : vector<8x20xf32>
      %103 = vector.extract_strided_slice %28 {offsets = [8, 0, 0], sizes = [1, 8, 20], strides = [1, 1, 1]} : vector<17x8x20xf32> to vector<1x8x20xf32>
      %104 = vector.shape_cast %103 : vector<1x8x20xf32> to vector<8x20xf32>
      %cst_40 = arith.constant 1.000000e+00 : f32
      %105 = vector.broadcast %cst_40 : f32 to vector<8x20xf32>
      %106 = arith.cmpf ogt, %104, %105 : vector<8x20xf32>
      %cst_41 = arith.constant 9.000000e+00 : f32
      %107 = arith.addf %1, %cst_41 : f32
      %cst_42 = arith.constant 1.700000e+01 : f32
      %108 = vector.broadcast %107 : f32 to vector<8x20xf32>
      %109 = vector.broadcast %cst_42 : f32 to vector<8x20xf32>
      %110 = arith.select %106, %108, %109 : vector<8x20xi1>, vector<8x20xf32>
      %111 = arith.minimumf %102, %110 : vector<8x20xf32>
      %112 = vector.extract_strided_slice %28 {offsets = [9, 0, 0], sizes = [1, 8, 20], strides = [1, 1, 1]} : vector<17x8x20xf32> to vector<1x8x20xf32>
      %113 = vector.shape_cast %112 : vector<1x8x20xf32> to vector<8x20xf32>
      %cst_43 = arith.constant 1.000000e+00 : f32
      %114 = vector.broadcast %cst_43 : f32 to vector<8x20xf32>
      %115 = arith.cmpf ogt, %113, %114 : vector<8x20xf32>
      %cst_44 = arith.constant 1.000000e+01 : f32
      %116 = arith.addf %1, %cst_44 : f32
      %cst_45 = arith.constant 1.700000e+01 : f32
      %117 = vector.broadcast %116 : f32 to vector<8x20xf32>
      %118 = vector.broadcast %cst_45 : f32 to vector<8x20xf32>
      %119 = arith.select %115, %117, %118 : vector<8x20xi1>, vector<8x20xf32>
      %120 = arith.minimumf %111, %119 : vector<8x20xf32>
      %121 = vector.extract_strided_slice %28 {offsets = [10, 0, 0], sizes = [1, 8, 20], strides = [1, 1, 1]} : vector<17x8x20xf32> to vector<1x8x20xf32>
      %122 = vector.shape_cast %121 : vector<1x8x20xf32> to vector<8x20xf32>
      %cst_46 = arith.constant 1.000000e+00 : f32
      %123 = vector.broadcast %cst_46 : f32 to vector<8x20xf32>
      %124 = arith.cmpf ogt, %122, %123 : vector<8x20xf32>
      %cst_47 = arith.constant 1.100000e+01 : f32
      %125 = arith.addf %1, %cst_47 : f32
      %cst_48 = arith.constant 1.700000e+01 : f32
      %126 = vector.broadcast %125 : f32 to vector<8x20xf32>
      %127 = vector.broadcast %cst_48 : f32 to vector<8x20xf32>
      %128 = arith.select %124, %126, %127 : vector<8x20xi1>, vector<8x20xf32>
      %129 = arith.minimumf %120, %128 : vector<8x20xf32>
      %130 = vector.extract_strided_slice %28 {offsets = [11, 0, 0], sizes = [1, 8, 20], strides = [1, 1, 1]} : vector<17x8x20xf32> to vector<1x8x20xf32>
      %131 = vector.shape_cast %130 : vector<1x8x20xf32> to vector<8x20xf32>
      %cst_49 = arith.constant 1.000000e+00 : f32
      %132 = vector.broadcast %cst_49 : f32 to vector<8x20xf32>
      %133 = arith.cmpf ogt, %131, %132 : vector<8x20xf32>
      %cst_50 = arith.constant 1.200000e+01 : f32
      %134 = arith.addf %1, %cst_50 : f32
      %cst_51 = arith.constant 1.700000e+01 : f32
      %135 = vector.broadcast %134 : f32 to vector<8x20xf32>
      %136 = vector.broadcast %cst_51 : f32 to vector<8x20xf32>
      %137 = arith.select %133, %135, %136 : vector<8x20xi1>, vector<8x20xf32>
      %138 = arith.minimumf %129, %137 : vector<8x20xf32>
      %139 = vector.extract_strided_slice %28 {offsets = [12, 0, 0], sizes = [1, 8, 20], strides = [1, 1, 1]} : vector<17x8x20xf32> to vector<1x8x20xf32>
      %140 = vector.shape_cast %139 : vector<1x8x20xf32> to vector<8x20xf32>
      %cst_52 = arith.constant 1.000000e+00 : f32
      %141 = vector.broadcast %cst_52 : f32 to vector<8x20xf32>
      %142 = arith.cmpf ogt, %140, %141 : vector<8x20xf32>
      %cst_53 = arith.constant 1.300000e+01 : f32
      %143 = arith.addf %1, %cst_53 : f32
      %cst_54 = arith.constant 1.700000e+01 : f32
      %144 = vector.broadcast %143 : f32 to vector<8x20xf32>
      %145 = vector.broadcast %cst_54 : f32 to vector<8x20xf32>
      %146 = arith.select %142, %144, %145 : vector<8x20xi1>, vector<8x20xf32>
      %147 = arith.minimumf %138, %146 : vector<8x20xf32>
      %148 = vector.extract_strided_slice %28 {offsets = [13, 0, 0], sizes = [1, 8, 20], strides = [1, 1, 1]} : vector<17x8x20xf32> to vector<1x8x20xf32>
      %149 = vector.shape_cast %148 : vector<1x8x20xf32> to vector<8x20xf32>
      %cst_55 = arith.constant 1.000000e+00 : f32
      %150 = vector.broadcast %cst_55 : f32 to vector<8x20xf32>
      %151 = arith.cmpf ogt, %149, %150 : vector<8x20xf32>
      %cst_56 = arith.constant 1.400000e+01 : f32
      %152 = arith.addf %1, %cst_56 : f32
      %cst_57 = arith.constant 1.700000e+01 : f32
      %153 = vector.broadcast %152 : f32 to vector<8x20xf32>
      %154 = vector.broadcast %cst_57 : f32 to vector<8x20xf32>
      %155 = arith.select %151, %153, %154 : vector<8x20xi1>, vector<8x20xf32>
      %156 = arith.minimumf %147, %155 : vector<8x20xf32>
      %157 = vector.extract_strided_slice %28 {offsets = [14, 0, 0], sizes = [1, 8, 20], strides = [1, 1, 1]} : vector<17x8x20xf32> to vector<1x8x20xf32>
      %158 = vector.shape_cast %157 : vector<1x8x20xf32> to vector<8x20xf32>
      %cst_58 = arith.constant 1.000000e+00 : f32
      %159 = vector.broadcast %cst_58 : f32 to vector<8x20xf32>
      %160 = arith.cmpf ogt, %158, %159 : vector<8x20xf32>
      %cst_59 = arith.constant 1.500000e+01 : f32
      %161 = arith.addf %1, %cst_59 : f32
      %cst_60 = arith.constant 1.700000e+01 : f32
      %162 = vector.broadcast %161 : f32 to vector<8x20xf32>
      %163 = vector.broadcast %cst_60 : f32 to vector<8x20xf32>
      %164 = arith.select %160, %162, %163 : vector<8x20xi1>, vector<8x20xf32>
      %165 = arith.minimumf %156, %164 : vector<8x20xf32>
      %166 = vector.extract_strided_slice %28 {offsets = [15, 0, 0], sizes = [1, 8, 20], strides = [1, 1, 1]} : vector<17x8x20xf32> to vector<1x8x20xf32>
      %167 = vector.shape_cast %166 : vector<1x8x20xf32> to vector<8x20xf32>
      %cst_61 = arith.constant 1.000000e+00 : f32
      %168 = vector.broadcast %cst_61 : f32 to vector<8x20xf32>
      %169 = arith.cmpf ogt, %167, %168 : vector<8x20xf32>
      %cst_62 = arith.constant 1.600000e+01 : f32
      %170 = arith.addf %1, %cst_62 : f32
      %cst_63 = arith.constant 1.700000e+01 : f32
      %171 = vector.broadcast %170 : f32 to vector<8x20xf32>
      %172 = vector.broadcast %cst_63 : f32 to vector<8x20xf32>
      %173 = arith.select %169, %171, %172 : vector<8x20xi1>, vector<8x20xf32>
      %174 = arith.minimumf %165, %173 : vector<8x20xf32>
      %175 = vector.extract_strided_slice %28 {offsets = [16, 0, 0], sizes = [1, 8, 20], strides = [1, 1, 1]} : vector<17x8x20xf32> to vector<1x8x20xf32>
      %176 = vector.shape_cast %175 : vector<1x8x20xf32> to vector<8x20xf32>
      %cst_64 = arith.constant 1.000000e+00 : f32
      %177 = vector.broadcast %cst_64 : f32 to vector<8x20xf32>
      %178 = arith.cmpf ogt, %176, %177 : vector<8x20xf32>
      %cst_65 = arith.constant 1.700000e+01 : f32
      %179 = arith.addf %1, %cst_65 : f32
      %cst_66 = arith.constant 1.700000e+01 : f32
      %180 = vector.broadcast %179 : f32 to vector<8x20xf32>
      %181 = vector.broadcast %cst_66 : f32 to vector<8x20xf32>
      %182 = arith.select %178, %180, %181 : vector<8x20xi1>, vector<8x20xf32>
      %183 = arith.minimumf %174, %182 : vector<8x20xf32>
      %c0_67 = arith.constant 0 : index
      %c0_68 = arith.constant 0 : index
      %184 = vector.load %arg6[%c0_67, %c0_68] : memref<8x20xf32, #tpu.memory_space<vmem>>, vector<8x20xf32>
      tpu.vector_store %arg6[%c0_67, %c0_68], %183 {strides = array<i32>} : memref<8x20xf32, #tpu.memory_space<vmem>>, vector<8x20xf32>,
    } else {
    }
    %c0_i32_2 = arith.constant 0 : i32
    %8 = arith.cmpi eq, %arg1, %c0_i32_2 : i32
    %9 = arith.extui %8 : i1 to i32
    %c0_i32_3 = arith.constant 0 : i32
    %10 = arith.cmpi ne, %9, %c0_i32_3 : i32
    scf.if %10 {
      %cst_4 = arith.constant 2.000000e+00 : f32
      %11 = vector.broadcast %cst_4 : f32 to vector<1x8x20xf32>
      %c16 = arith.constant 16 : index
      %c0 = arith.constant 0 : index
      %c0_5 = arith.constant 0 : index
      %12 = vector.load %arg5[%c16, %c0, %c0_5] : memref<17x8x20xf32, #tpu.memory_space<vmem>>, vector<1x8x20xf32>
      tpu.vector_store %arg5[%c16, %c0, %c0_5], %11 {strides = array<i32>} : memref<17x8x20xf32, #tpu.memory_space<vmem>>, vector<1x8x20xf32>,
      %c0_6 = arith.constant 0 : index
      %c0_7 = arith.constant 0 : index
      %13 = vector.load %arg6[%c0_6, %c0_7] : memref<8x20xf32, #tpu.memory_space<vmem>>, vector<8x20xf32>
      %cst_8 = arith.constant 1.600000e+01 : f32
      %14 = vector.broadcast %cst_8 : f32 to vector<8x20xf32>
      %15 = arith.minimumf %13, %14 : vector<8x20xf32>
      %c0_9 = arith.constant 0 : index
      %c0_10 = arith.constant 0 : index
      %16 = vector.load %arg6[%c0_9, %c0_10] : memref<8x20xf32, #tpu.memory_space<vmem>>, vector<8x20xf32>
      tpu.vector_store %arg6[%c0_9, %c0_10], %15 {strides = array<i32>} : memref<8x20xf32, #tpu.memory_space<vmem>>, vector<8x20xf32>,
    } else {
    }
    return
  }
  func.func @transform_0(%arg0: i32, %arg1: i32) -> (i32, i32) {
    %c0_i32 = arith.constant 0 : i32
    %c0_i32_0 = arith.constant 0 : i32
    return %arg0, %c0_i32 : i32, i32
  }
  func.func @transform_1(%arg0: i32, %arg1: i32) -> (i32, i32) {
    %c0_i32 = arith.constant 0 : i32
    %c0_i32_0 = arith.constant 0 : i32
    %c0_i32_1 = arith.constant 0 : i32
    return %c0_i32, %c0_i32_0 : i32, i32
  }
  func.func @transform_2(%arg0: i32, %arg1: i32) -> (i32, i32) {
    %c0_i32 = arith.constant 0 : i32
    %c0_i32_0 = arith.constant 0 : i32
    %c0_i32_1 = arith.constant 0 : i32
    return %c0_i32, %c0_i32_0 : i32, i32
  }
  func.func @transform_3(%arg0: i32, %arg1: i32) -> (i32, i32, i32) {
    %c0_i32 = arith.constant 0 : i32
    %c0_i32_0 = arith.constant 0 : i32
    return %arg1, %arg0, %c0_i32 : i32, i32, i32
  }
  func.func @transform_4(%arg0: i32, %arg1: i32) -> (i32, i32) {
    %c0_i32 = arith.constant 0 : i32
    %c0_i32_0 = arith.constant 0 : i32
    return %arg0, %c0_i32 : i32, i32
  }
}

</mosaic_0001>

<bundles_post_ra>
// kernel: tpu_custom_call.1
= control target key start
LH: loop header
LB: loop body
LE: loop exit
PB: predicated region body
PF: predicated region fallthrough
CT: control target
= control target key end

     0   :  { %10 = vsyncpa [#allocation3], 0  ;;  %v806_v1 = vmov 0.0   ;;  %vm807_vm0 = vmmov 0   ;;  %s992_s0 = inlined_call_operand.vmem [shape: f32[8,32], index: 0, kind: input, shape index: {}]   ;;  %s993_s1 = inlined_call_operand.vmem [shape: bf16[32,20], index: 1, kind: input, shape index: {}]   ;;  %s994_s2 = inlined_call_operand.vmem [shape: bf16[32,20], index: 2, kind: input, shape index: {}]   ;;  %s995_s3 = inlined_call_operand.hbm [shape: f32[17,8,20], index: 3, kind: output, shape index: {0}]   ;;  %s996_s4 = inlined_call_operand.hbm [shape: f32[8,20], index: 4, kind: output, shape index: {1}]  }
   0x1   :  { %v758_v0 = vld [vmem:[%s994_s2 + $0x8] sm:$0xff]   ;;  %670 = vmatprep.subr.bf16.mxu0 %v806_v1  ;;  %710 = vmatprep.subr.bf16.mxu1 %v806_v1  ;;  %v760_v3 = vld [vmem:[%s994_s2] sm:$0xff]  }
   0x2   :  { %v759_v2 = vld [vmem:[%s993_s1 + $0x8] sm:$0xff]   ;;  %671 = vmatpush3.bf16.msra.mxu0 %v758_v0  ;;  %674 = vmatprep.mubr.msk.bf16.mxu0 %vm807_vm0, %v806_v1  ;;  %v761_v4 = vld [vmem:[%s993_s1] sm:$0xff]  }
   0x3   :  { %711 = vmatpush3.bf16.msra.mxu1 %v759_v2  ;;  %672 = vmatprep.subr.bf16.mxu0 %v806_v1  ;;  %v862_v5 = vld [vmem:[%s992_s0] sm:$0xff] }
   0x4   :  { %712 = vmatprep.subr.bf16.mxu1 %v806_v1  ;;  %714 = vmatprep.mubr.msk.bf16.mxu1 %vm807_vm0, %v806_v1 }
   0x5   :  { %11 = vsyncpa [#allocation5], 0  ;;  %vm574_vm1 = vcmp.le.f32.partialorder %v862_v5, 0.0  ;;  %vm575_vm2 = vcmp.le.f32.partialorder %v862_v5, 1.0  ;;  %vm182_vm3 = vcmask 261120   ;;  %vm576_vm4 = vcmp.le.f32.partialorder %v862_v5, 2.0 }
   0x6   :  { %673 = vmatpush3.bf16.msra.mxu0 %v760_v3  ;;  %v591_v6 = vsel %vm574_vm1, 1.0, %v806_v1  ;;  %v592_v7 = vsel %vm575_vm2, 1.0, %v806_v1  ;;  %vm577_vm5 = vcmp.le.f32.partialorder %v862_v5, 3.0  ;;  %v593_v9 = vsel %vm576_vm4, 1.0, %v806_v1  ;;  %s809_s0 = smov [#allocation2]  }
   0x7   :  { %713 = vmatpush3.bf16.msra.mxu1 %v761_v4  ;;  %v639_v8 = vpack.c.bf16 %v592_v7, %v591_v6  ;;  %v594_v10 = vsel %vm577_vm5, 1.0, %v806_v1  ;;  %vm578_vm6 = vcmp.le.f32.partialorder %v862_v5, 4.0  ;;  %vm579_vm7 = vcmp.le.f32.partialorder %v862_v5, 5.0  ;;  %s549_s1 = sshll.u32 %s809_s0, 4  ;;  %s550_s1 = int_to_ptr.vmem [resolvable:$true] %s549_s1 }
   0x8   :  { %v640_v11 = vpack.c.bf16 %v594_v10, %v593_v9  ;;  %v595_v12 = vsel %vm578_vm6, 1.0, %v806_v1  ;;  %v596_v13 = vsel %vm579_vm7, 1.0, %v806_v1  ;;  %vm580_vm8 = vcmp.le.f32.partialorder %v862_v5, 6.0  ;;  %s762_s2 = scalar_lea.vmem %s550_s1, 2176  ;;  %p767_p1 = scmp.lt.s32.totalorder %s550_s1, %s550_s1 }
   0x9   :  { %675 = vmatmul.mubr.msk.bf16.vlgmr.msra.gmra.mxu0 %vm182_vm3, %v639_v8  ;;  %v641_v14 = vpack.c.bf16 %v596_v13, %v595_v12  ;;  %vm581_vm9 = vcmp.le.f32.partialorder %v862_v5, 7.0  ;;  %v597_v15 = vsel %vm580_vm8, 1.0, %v806_v1  ;;  %vm582_vm10 = vcmp.le.f32.partialorder %v862_v5, 8.0  ;;  %p763_p0 = scmp.ne.s32.totalorder %s550_s1, %s762_s2  ;;  %p768_p2 = scmp.lt.s32.totalorder %s762_s2, %s762_s2 }
   0xa   :  { %715 = vmatmul.mubr.msk.bf16.vlgmr.msra.gmra.mxu1 %vm182_vm3, %v639_v8  ;;  %678 = vmatprep.mubr.msk.bf16.mxu0 %vm807_vm0, %v806_v1  ;;  %v598_v16 = vsel %vm581_vm9, 1.0, %v806_v1  ;;  %vm583_vm11 = vcmp.le.f32.partialorder %v862_v5, 9.0  ;;  %v599_v18 = vsel %vm582_vm10, 1.0, %v806_v1  ;;  %vm584_vm12 = vcmp.le.f32.partialorder %v862_v5, 10.0 }
   0xb   :  { %718 = vmatprep.mubr.msk.bf16.mxu1 %vm807_vm0, %v806_v1  ;;  %v642_v17 = vpack.c.bf16 %v598_v16, %v597_v15  ;;  %v600_v19 = vsel %vm583_vm11, 1.0, %v806_v1  ;;  %vm585_vm13 = vcmp.le.f32.partialorder %v862_v5, 11.0  ;;  %v601_v21 = vsel %vm584_vm12, 1.0, %v806_v1  ;;  %p769_p3 = por %p768_p2, %p767_p1 }
   0xc   :  { %v643_v20 = vpack.c.bf16 %v600_v19, %v599_v18  ;;  %v602_v22 = vsel %vm585_vm13, 1.0, %v806_v1  ;;  %vm586_vm14 = vcmp.le.f32.partialorder %v862_v5, 12.0  ;;  %vm587_vm15 = vcmp.le.f32.partialorder %v862_v5, 13.0 }
   0xd   :  { %v644_v23 = vpack.c.bf16 %v602_v22, %v601_v21  ;;  %v603_v24 = vsel %vm586_vm14, 1.0, %v806_v1  ;;  %v604_v25 = vsel %vm587_vm15, 1.0, %v806_v1  ;;  %vm588_vm1 = vcmp.le.f32.partialorder %v862_v5, 14.0  ;;  %p770_p4 = pnand %p769_p3, %p763_p0 }
   0xe   :  { %v645_v26 = vpack.c.bf16 %v604_v25, %v603_v24  ;;  %vm589_vm2 = vcmp.le.f32.partialorder %v862_v5, 15.0  ;;  %v605_v27 = vsel %vm588_vm1, 1.0, %v806_v1  ;;  %vm590_vm4 = vcmp.le.f32.partialorder %v862_v5, 16.0 }
   0xf   :  { %v606_v28 = vsel %vm589_vm2, 1.0, %v806_v1  ;;  %v607_v30 = vsel %vm590_vm4, 1.0, %v806_v1  ;;  %vm25_vm5 = vcmask 162816   ;;  %v808_v32 = vmov 17.0  }
  0x10   :  { %v646_v29 = vpack.c.bf16 %v606_v28, %v605_v27  ;;  %v647_v31 = vpack.c.bf16 %v607_v30, %v607_v30  ;;  %26 = vst.msk [vmem:[#allocation4] sm:$0xff] %vm25_vm5, %v808_v32 }
  0x11   :  { %679 = vmatmul.mubr.msk.bf16.gmra.mxu0 %vm182_vm3, %v640_v11 }
  0x12   :  { %719 = vmatmul.mubr.msk.bf16.gmra.mxu1 %vm182_vm3, %v640_v11  ;;  %682 = vmatprep.mubr.msk.bf16.mxu0 %vm807_vm0, %v806_v1 }
  0x13   :  { %722 = vmatprep.mubr.msk.bf16.mxu1 %vm807_vm0, %v806_v1 }
  0x17   :  { %v448_v10 = vld [vmem:[#allocation4] sm:$0xff] }
  0x19   :  { %683 = vmatmul.mubr.msk.bf16.gmra.mxu0 %vm182_vm3, %v641_v14 }
  0x1a   :  { %723 = vmatmul.mubr.msk.bf16.gmra.mxu1 %vm182_vm3, %v641_v14  ;;  %686 = vmatprep.mubr.msk.bf16.mxu0 %vm807_vm0, %v806_v1 }
  0x1b   :  { %726 = vmatprep.mubr.msk.bf16.mxu1 %vm807_vm0, %v806_v1 }
  0x21   :  { %687 = vmatmul.mubr.msk.bf16.gmra.mxu0 %vm182_vm3, %v642_v17 }
  0x22   :  { %727 = vmatmul.mubr.msk.bf16.gmra.mxu1 %vm182_vm3, %v642_v17  ;;  %690 = vmatprep.mubr.msk.bf16.mxu0 %vm807_vm0, %v806_v1 }
  0x23   :  { %730 = vmatprep.mubr.msk.bf16.mxu1 %vm807_vm0, %v806_v1 }
  0x29   :  { %691 = vmatmul.mubr.msk.bf16.gmra.mxu0 %vm182_vm3, %v643_v20 }
  0x2a   :  { %731 = vmatmul.mubr.msk.bf16.gmra.mxu1 %vm182_vm3, %v643_v20  ;;  %694 = vmatprep.mubr.msk.bf16.mxu0 %vm807_vm0, %v806_v1 }
  0x2b   :  { %734 = vmatprep.mubr.msk.bf16.mxu1 %vm807_vm0, %v806_v1 }
  0x31   :  { %695 = vmatmul.mubr.msk.bf16.gmra.mxu0 %vm182_vm3, %v644_v23 }
  0x32   :  { %735 = vmatmul.mubr.msk.bf16.gmra.mxu1 %vm182_vm3, %v644_v23  ;;  %698 = vmatprep.mubr.msk.bf16.mxu0 %vm807_vm0, %v806_v1 }
  0x33   :  { %738 = vmatprep.mubr.msk.bf16.mxu1 %vm807_vm0, %v806_v1 }
  0x39   :  { %699 = vmatmul.mubr.msk.bf16.gmra.mxu0 %vm182_vm3, %v645_v26 }
  0x3a   :  { %739 = vmatmul.mubr.msk.bf16.gmra.mxu1 %vm182_vm3, %v645_v26  ;;  %702 = vmatprep.mubr.msk.bf16.mxu0 %vm807_vm0, %v806_v1 }
  0x3b   :  { %742 = vmatprep.mubr.msk.bf16.mxu1 %vm807_vm0, %v806_v1 }
  0x41   :  { %703 = vmatmul.mubr.msk.bf16.gmra.mxu0 %vm182_vm3, %v646_v29 }
  0x42   :  { %743 = vmatmul.mubr.msk.bf16.gmra.mxu1 %vm182_vm3, %v646_v29  ;;  %706 = vmatprep.mubr.msk.bf16.mxu0 %vm807_vm0, %v806_v1 }
  0x43   :  { %746 = vmatprep.mubr.msk.bf16.mxu1 %vm807_vm0, %v806_v1 }
  0x49   :  { %707 = vmatmul.mubr.msk.bf16.gmra.mxu0 %vm182_vm3, %v647_v31 }
  0x4a   :  { %747 = vmatmul.mubr.msk.bf16.gmra.mxu1 %vm182_vm3, %v647_v31 }
  0xc9   :  { %v244_v33 = vpop.f32.mrf.mxu0 }
  0xca   :  { %v360_v34 = vpop.f32.mrf.mxu1 }
  0xcb   :  { %v361_v35 = vadd.f32 %v360_v34, %v244_v33  ;;  %v676_v36 = vpop.f32.mrf.mxu0 }
  0xcc   :  { %v716_v37 = vpop.f32.mrf.mxu1 }
  0xcd   :  { %431 = vst.msk [vmem:[#allocation2] sm:$0xff] %vm25_vm5, %v361_v35  ;;  %v247_v38 = vpop.f32.mrf.mxu0  ;;  %vm449_vm0 = vcmp.gt.f32.partialorder %v361_v35, 1.0 }
  0xce   :  { %v363_v39 = vpop.f32.mrf.mxu1  ;;  %v452_v11 = vsel %vm449_vm0, 1.0, %v808_v32 }
  0xcf   :  { %v364_v40 = vadd.f32 %v363_v39, %v247_v38  ;;  %v677_v41 = vpop.f32.mrf.mxu0  ;;  %v453_v17 = vmin.f32 %v448_v10, %v452_v11 }
  0xd0   :  { %v717_v42 = vpop.f32.mrf.mxu1 }
  0xd1   :  { %432 = vst.msk [vmem:[#allocation2 + $0x8] sm:$0xff] %vm25_vm5, %v364_v40  ;;  %v252_v43 = vpop.f32.mrf.mxu0  ;;  %vm454_vm3 = vcmp.gt.f32.partialorder %v364_v40, 1.0 }
  0xd2   :  { %v368_v44 = vpop.f32.mrf.mxu1  ;;  %v457_v15 = vsel %vm454_vm3, 2.0, %v808_v32 }
  0xd3   :  { %v369_v45 = vadd.f32 %v368_v44, %v252_v43  ;;  %v680_v46 = vpop.f32.mrf.mxu0  ;;  %v458_v21 = vmin.f32 %v453_v17, %v457_v15 }
  0xd4   :  { %v720_v47 = vpop.f32.mrf.mxu1 }
  0xd5   :  { %433 = vst.msk [vmem:[#allocation2 + $0x10] sm:$0xff] %vm25_vm5, %v369_v45  ;;  %v255_v48 = vpop.f32.mrf.mxu0  ;;  %vm459_vm6 = vcmp.gt.f32.partialorder %v369_v45, 1.0 }
  0xd6   :  { %v371_v49 = vpop.f32.mrf.mxu1  ;;  %v462_v19 = vsel %vm459_vm6, 3.0, %v808_v32 }
  0xd7   :  { %v372_v50 = vadd.f32 %v371_v49, %v255_v48  ;;  %v681_v51 = vpop.f32.mrf.mxu0  ;;  %v463_v26 = vmin.f32 %v458_v21, %v462_v19 }
  0xd8   :  { %v721_v52 = vpop.f32.mrf.mxu1 }
  0xd9   :  { %434 = vst.msk [vmem:[#allocation2 + $0x18] sm:$0xff] %vm25_vm5, %v372_v50  ;;  %v260_v53 = vpop.f32.mrf.mxu0  ;;  %vm464_vm7 = vcmp.gt.f32.partialorder %v372_v50, 1.0 }
  0xda   :  { %v376_v54 = vpop.f32.mrf.mxu1  ;;  %v467_v24 = vsel %vm464_vm7, 4.0, %v808_v32 }
  0xdb   :  { %v377_v55 = vadd.f32 %v376_v54, %v260_v53  ;;  %v684_v56 = vpop.f32.mrf.mxu0  ;;  %v468_v30 = vmin.f32 %v463_v26, %v467_v24  ;;  %v810_v26 = vmov 2.0  }
  0xdc   :  { %v724_v57 = vpop.f32.mrf.mxu1 }
  0xdd   :  { %435 = vst.msk [vmem:[#allocation2 + $0x20] sm:$0xff] %vm25_vm5, %v377_v55  ;;  %v263_v58 = vpop.f32.mrf.mxu0  ;;  %vm469_vm8 = vcmp.gt.f32.partialorder %v377_v55, 1.0 }
  0xde   :  { %v379_v59 = vpop.f32.mrf.mxu1  ;;  %v472_v28 = vsel %vm469_vm8, 5.0, %v808_v32 }
  0xdf   :  { %v380_v60 = vadd.f32 %v379_v59, %v263_v58  ;;  %v685_v61 = vpop.f32.mrf.mxu0  ;;  %v473_v36 = vmin.f32 %v468_v30, %v472_v28 }
  0xe0   :  { %v725_v62 = vpop.f32.mrf.mxu1 }
  0xe1   :  { %436 = vst.msk [vmem:[#allocation2 + $0x28] sm:$0xff] %vm25_vm5, %v380_v60  ;;  %v268_v63 = vpop.f32.mrf.mxu0  ;;  %vm474_vm9 = vcmp.gt.f32.partialorder %v380_v60, 1.0 }
  0xe2   :  { %v384_v0 = vpop.f32.mrf.mxu1  ;;  %v477_v34 = vsel %vm474_vm9, 6.0, %v808_v32 }
  0xe3   :  { %v385_v1 = vadd.f32 %v384_v0, %v268_v63  ;;  %v688_v2 = vpop.f32.mrf.mxu0  ;;  %v478_v40 = vmin.f32 %v473_v36, %v477_v34 }
  0xe4   :  { %v728_v3 = vpop.f32.mrf.mxu1 }
  0xe5   :  { %437 = vst.msk [vmem:[#allocation2 + $0x30] sm:$0xff] %vm25_vm5, %v385_v1  ;;  %v271_v4 = vpop.f32.mrf.mxu0  ;;  %vm479_vm10 = vcmp.gt.f32.partialorder %v385_v1, 1.0 }
  0xe6   :  { %v387_v5 = vpop.f32.mrf.mxu1  ;;  %v482_v38 = vsel %vm479_vm10, 7.0, %v808_v32 }
  0xe7   :  { %v388_v6 = vadd.f32 %v387_v5, %v271_v4  ;;  %v689_v7 = vpop.f32.mrf.mxu0  ;;  %v483_v45 = vmin.f32 %v478_v40, %v482_v38 }
  0xe8   :  { %v729_v8 = vpop.f32.mrf.mxu1 }
  0xe9   :  { %438 = vst.msk [vmem:[#allocation2 + $0x38] sm:$0xff] %vm25_vm5, %v388_v6  ;;  %v276_v9 = vpop.f32.mrf.mxu0  ;;  %vm484_vm11 = vcmp.gt.f32.partialorder %v388_v6, 1.0 }
  0xea   :  { %v392_v12 = vpop.f32.mrf.mxu1  ;;  %v487_v43 = vsel %vm484_vm11, 8.0, %v808_v32 }
  0xeb   :  { %v393_v13 = vadd.f32 %v392_v12, %v276_v9  ;;  %v692_v14 = vpop.f32.mrf.mxu0  ;;  %v488_v49 = vmin.f32 %v483_v45, %v487_v43 }
  0xec   :  { %v732_v16 = vpop.f32.mrf.mxu1 }
  0xed   :  { %439 = vst.msk [vmem:[#allocation2 + $0x40] sm:$0xff] %vm25_vm5, %v393_v13  ;;  %v279_v18 = vpop.f32.mrf.mxu0  ;;  %vm489_vm12 = vcmp.gt.f32.partialorder %v393_v13, 1.0 }
  0xee   :  { %v395_v20 = vpop.f32.mrf.mxu1  ;;  %v492_v47 = vsel %vm489_vm12, 9.0, %v808_v32 }
  0xef   :  { %v396_v22 = vadd.f32 %v395_v20, %v279_v18  ;;  %v693_v23 = vpop.f32.mrf.mxu0  ;;  %v493_v54 = vmin.f32 %v488_v49, %v492_v47 }
  0xf0   :  { %v733_v25 = vpop.f32.mrf.mxu1 }
  0xf1   :  { %440 = vst.msk [vmem:[#allocation2 + $0x48] sm:$0xff] %vm25_vm5, %v396_v22  ;;  %v284_v27 = vpop.f32.mrf.mxu0  ;;  %vm494_vm13 = vcmp.gt.f32.partialorder %v396_v22, 1.0 }
  0xf2   :  { %v400_v29 = vpop.f32.mrf.mxu1  ;;  %v497_v52 = vsel %vm494_vm13, 10.0, %v808_v32 }
  0xf3   :  { %v401_v31 = vadd.f32 %v400_v29, %v284_v27  ;;  %v696_v33 = vpop.f32.mrf.mxu0  ;;  %v498_v58 = vmin.f32 %v493_v54, %v497_v52 }
  0xf4   :  { %v736_v35 = vpop.f32.mrf.mxu1 }
  0xf5   :  { %441 = vst.msk [vmem:[#allocation2 + $0x50] sm:$0xff] %vm25_vm5, %v401_v31  ;;  %v287_v37 = vpop.f32.mrf.mxu0  ;;  %vm499_vm14 = vcmp.gt.f32.partialorder %v401_v31, 1.0 }
  0xf6   :  { %v403_v39 = vpop.f32.mrf.mxu1  ;;  %v502_v56 = vsel %vm499_vm14, 11.0, %v808_v32 }
  0xf7   :  { %v404_v41 = vadd.f32 %v403_v39, %v287_v37  ;;  %v697_v42 = vpop.f32.mrf.mxu0  ;;  %v503_v63 = vmin.f32 %v498_v58, %v502_v56 }
  0xf8   :  { %v737_v44 = vpop.f32.mrf.mxu1 }
  0xf9   :  { %442 = vst.msk [vmem:[#allocation2 + $0x58] sm:$0xff] %vm25_vm5, %v404_v41  ;;  %v292_v46 = vpop.f32.mrf.mxu0  ;;  %vm504_vm15 = vcmp.gt.f32.partialorder %v404_v41, 1.0 }
  0xfa   :  { %v408_v48 = vpop.f32.mrf.mxu1  ;;  %v507_v61 = vsel %vm504_vm15, 12.0, %v808_v32 }
  0xfb   :  { %v409_v50 = vadd.f32 %v408_v48, %v292_v46  ;;  %v700_v51 = vpop.f32.mrf.mxu0  ;;  %v508_v3 = vmin.f32 %v503_v63, %v507_v61 }
  0xfc   :  { %v740_v53 = vpop.f32.mrf.mxu1 }
  0xfd   :  { %443 = vst.msk [vmem:[#allocation2 + $0x60] sm:$0xff] %vm25_vm5, %v409_v50  ;;  %v295_v55 = vpop.f32.mrf.mxu0  ;;  %vm509_vm1 = vcmp.gt.f32.partialorder %v409_v50, 1.0 }
  0xfe   :  { %v411_v57 = vpop.f32.mrf.mxu1  ;;  %v512_v1 = vsel %vm509_vm1, 13.0, %v808_v32 }
  0xff   :  { %v412_v59 = vadd.f32 %v411_v57, %v295_v55  ;;  %v701_v60 = vpop.f32.mrf.mxu0  ;;  %v513_v8 = vmin.f32 %v508_v3, %v512_v1 }
 0x100   :  { %v741_v62 = vpop.f32.mrf.mxu1 }
 0x101   :  { %444 = vst.msk [vmem:[#allocation2 + $0x68] sm:$0xff] %vm25_vm5, %v412_v59  ;;  %vm514_vm2 = vcmp.gt.f32.partialorder %v412_v59, 1.0  ;;  %v300_v0 = vpop.f32.mrf.mxu0 }
 0x102   :  { %v416_v2 = vpop.f32.mrf.mxu1  ;;  %v517_v6 = vsel %vm514_vm2, 14.0, %v808_v32 }
 0x103   :  { %v417_v4 = vadd.f32 %v416_v2, %v300_v0  ;;  %v704_v5 = vpop.f32.mrf.mxu0  ;;  %v518_v12 = vmin.f32 %v513_v8, %v517_v6 }
 0x104   :  { %v744_v7 = vpop.f32.mrf.mxu1 }
 0x105   :  { %445 = vst.msk [vmem:[#allocation2 + $0x70] sm:$0xff] %vm25_vm5, %v417_v4  ;;  %vm519_vm4 = vcmp.gt.f32.partialorder %v417_v4, 1.0  ;;  %v303_v9 = vpop.f32.mrf.mxu0 }
 0x106   :  { %v522_v10 = vsel %vm519_vm4, 15.0, %v808_v32  ;;  %v419_v11 = vpop.f32.mrf.mxu1 }
 0x107   :  { %v420_v13 = vadd.f32 %v419_v11, %v303_v9  ;;  %v705_v14 = vpop.f32.mrf.mxu0  ;;  %v523_v16 = vmin.f32 %v518_v12, %v522_v10 }
 0x108   :  { %v745_v15 = vpop.f32.mrf.mxu1 }
 0x109   :  { %446 = vst.msk [vmem:[#allocation2 + $0x78] sm:$0xff] %vm25_vm5, %v420_v13  ;;  %vm524_vm0 = vcmp.gt.f32.partialorder %v420_v13, 1.0  ;;  %v308_v17 = vpop.f32.mrf.mxu0 }
 0x10a   :  { %v527_v18 = vsel %vm524_vm0, 16.0, %v808_v32  ;;  %v424_v19 = vpop.f32.mrf.mxu1 }
 0x10b   :  { %v528_v20 = vmin.f32 %v523_v16, %v527_v18  ;;  %v425_v21 = vadd.f32 %v424_v19, %v308_v17  ;;  %v708_v22 = vpop.f32.mrf.mxu0 }
 0x10c   :  { %v748_v23 = vpop.f32.mrf.mxu1 }
 0x10d   :  { %v533_v24 = vmin.f32 %v528_v20, 17.0  ;;  %447 = vst.msk [vmem:[#allocation2 + $0x80] sm:$0xff] %vm25_vm5, %v425_v21  ;;  %v311_v25 = vpop.f32.mrf.mxu0 }
 0x10e   :  { %540 = vst.msk [vmem:[#allocation2 + $0x80] sm:$0xff] %vm25_vm5, %v810_v26  ;;  %v427_v27 = vpop.f32.mrf.mxu1 }
 0x10f   :  { %534 = vst.msk [vmem:[#allocation4] sm:$0xff] %vm25_vm5, %v533_v24  ;;  %v709_v28 = vpop.f32.mrf.mxu0 }
 0x110   :  { %773 = shalt.err (!%p770_p4)
}
 0x111   :  { %s811_s25 = smov 128   ;;  %s812_s26 = smov 8   ;;  %v749_v32 = vpop.f32.mrf.mxu1 }
 0x112   :  { %555 = dma.vmem_to_hbm [thread:$0]  %s550_s1, 2176, %s995_s3, [#allocation3], %s811_s25, %s811_s25, %s812_s26  }
 0x113   :  { %s813_s29 = smov [#allocation4]  }
 0x114   :  { %s562_s30 = sshll.u32 %s813_s29, 4  ;;  %s563_s30 = int_to_ptr.vmem [resolvable:$true] %s562_s30 }
 0x115   :  { %s782_s5 = scalar_lea.vmem %s563_s30, 128  ;;  %p787_p6 = scmp.lt.s32.totalorder %s563_s30, %s563_s30 }
 0x116   :  { %v541_v29 = vld [vmem:[#allocation4] sm:$0xff]  ;;  %p783_p5 = scmp.ne.s32.totalorder %s563_s30, %s782_s5  ;;  %p788_p7 = scmp.lt.s32.totalorder %s782_s5, %s782_s5 }
 0x117   :  { %v542_v30 = vmin.f32 %v541_v29, 16.0 }
 0x118   :  { %p789_p8 = por %p788_p7, %p787_p6 }
 0x119   :  { %543 = vst.msk [vmem:[#allocation4] sm:$0xff] %vm25_vm5, %v542_v30 }
 0x11a   :  { %p790_p9 = pnand %p789_p8, %p783_p5 }
 0x11c   :  { %793 = shalt.err (!%p790_p9)
}
 0x11d   :  { %565 = dma.vmem_to_hbm [thread:$0]  %s563_s30, 128, %s996_s4, [#allocation5]  }
 0x11e   :  { %802 = dma.done.wait [#allocation3], 2176  }
 0x11f   :  { %803 = vsyncadd [#allocation3], 4294965120 }
 0x120   :  { %804 = dma.done.wait [#allocation5], 128  }
 0x121   :  { %805 = vsyncadd [#allocation5], 4294967168 }
 0x122   :  { %572 = vsyncpa [#allocation3], 1 }
 0x123   :  { %573 = vsyncpa [#allocation5], 1 }

</bundles_post_ra>
